<compile_context>
chip_gen: v5e
topology: v5e:2x2
jax: 0.10.0
libtpu: 0.0.40
codegen_flags: <defaults>
</compile_context>

<pallas_src>
import functools

import jax
import jax.numpy as jnp
from jax.experimental import pallas as pl
from jax.experimental.pallas import tpu as pltpu

_LANES = 128
_SUBLANES = 8


def _add_kernel(x_ref, c_ref, o_ref):
    # x_ref: (block_rows, 128) VMEM tile; c_ref: (1, 128) constant row
    # (stays VMEM-resident: its block index is grid-invariant).
    o_ref[...] = x_ref[...] + c_ref[...]


def _choose_block_rows(m, max_rows):
    """Largest multiple of 8 that divides m, is <= max_rows, and leaves >= 2
    grid steps whenever m >= 16 (so both v7x TensorCores get work)."""
    target = min(max_rows, m)
    if m >= 2 * _SUBLANES:
        target = min(target, m // 2)
    target = max(_SUBLANES, (target // _SUBLANES) * _SUBLANES)
    br = target
    while m % br != 0:  # m % 8 == 0, so br == 8 always terminates the loop
        br -= _SUBLANES
    return br


@functools.partial(jax.jit, static_argnames=("block_rows",))
def test_model_forward(x, a_weights, b_weights, block_rows=2048):
    """TestModel.forward: x + a.weights + b.weights.  x: (N, d) float32."""
    n, d = x.shape

    # Fold the scalar bias into the (1, d) weight row once, in the wrapper.
    const = (a_weights + b_weights).astype(x.dtype)  # (1, d)

    # Degenerate / non-lane-periodic sizes: plain fused XLA add (same roofline).
    if n == 0 or d == 0 or _LANES % d != 0:
        return x + const

    # Period-d constant row: valid because the flatten is row-major and d | 128.
    const_row = jnp.tile(const.reshape(-1), _LANES // d).reshape(1, _LANES)

    total = n * d
    compiler_kwargs = dict(dimension_semantics=("parallel",))

    if total % (_LANES * _SUBLANES) == 0:
        # Fast path: zero-copy lane-dense repack, no pad, no output slice.
        m = total // _LANES
        br = _choose_block_rows(m, block_rows)
        x2 = x.reshape(m, _LANES)
        padded = False
    else:
        # Ragged path: pad to an (m, 128) slab; let the pad/reshape producer
        # fuse into the pallas_call input DMA instead of materializing in HBM.
        m_raw = pl.cdiv(total, _LANES)
        m = pl.cdiv(m_raw, _SUBLANES) * _SUBLANES
        br = _choose_block_rows(m, block_rows)
        x2 = jnp.pad(x.reshape(-1), (0, m * _LANES - total)).reshape(m, _LANES)
        compiler_kwargs["allow_input_fusion"] = [True, False]
        padded = True

    out2 = pl.pallas_call(
        _add_kernel,
        out_shape=jax.ShapeDtypeStruct((m, _LANES), x.dtype),
        grid=(m // br,),
        in_specs=[
            pl.BlockSpec((br, _LANES), lambda i: (i, 0)),
            pl.BlockSpec((1, _LANES), lambda i: (0, 0)),
        ],
        out_specs=pl.BlockSpec((br, _LANES), lambda i: (i, 0)),
        compiler_params=pltpu.CompilerParams(**compiler_kwargs),
    )(x2, const_row)

    if padded:
        # Padded tail (which received const values) is dropped before return.
        return out2.reshape(-1)[:total].reshape(n, d)
    return out2.reshape(n, d)


if __name__ == "__main__":
    key = jax.random.PRNGKey(0)
    kx, ka, kb, kx2 = jax.random.split(key, 4)

    # Deterministic "parameters" matching torch.randn(1, 2) and torch.randn(1)
    a_weights = jax.random.normal(ka, (1, 2), dtype=jnp.float32)
    b_weights = jax.random.normal(kb, (1,), dtype=jnp.float32)

    # Small input consistent with broadcasting against (1, 2): batch=8
    x = jax.random.normal(kx, (8, 2), dtype=jnp.float32)
    out = jax.block_until_ready(test_model_forward(x, a_weights, b_weights))
    ref = x + a_weights + b_weights
    assert out.shape == ref.shape and out.dtype == ref.dtype
    assert jnp.allclose(out, ref, atol=1e-6), "mismatch vs reference (ragged path)"

    # Also exercise the zero-copy fast path (n*d multiple of 1024, >=2 grid steps)
    x_big = jax.random.normal(kx2, (1024, 2), dtype=jnp.float32)
    out_big = jax.block_until_ready(test_model_forward(x_big, a_weights, b_weights))
    ref_big = x_big + a_weights + b_weights
    assert jnp.allclose(out_big, ref_big, atol=1e-6), "mismatch vs reference (fast path)"

    print("KERNEL_OK")
</pallas_src>

<mosaic_0001>
module attributes {stable_mosaic.version = 11 : i64} {
  func.func @_add_kernel(%arg0: i32, %arg1: memref<8x128xf32, #tpu.memory_space<vmem>>, %arg2: memref<1x128xf32, #tpu.memory_space<vmem>>, %arg3: memref<8x128xf32, #tpu.memory_space<vmem>>) attributes {dimension_semantics = [#tpu.dimension_semantics<parallel>], iteration_bounds = array<i64: 1>, scalar_prefetch = 0 : i64, scratch_operands = 0 : i64, tpu.core_type = #tpu.core_type<tc>, window_params = [{transform_indices = @transform_0, window_bounds = array<i64: 8, 128>}, {pipeline_mode = #tpu.pipeline_mode<synchronous>, transform_indices = @transform_1, window_bounds = array<i64: 1, 128>}, {transform_indices = @transform_2, window_bounds = array<i64: 8, 128>}]} {
    %c0 = arith.constant 0 : index
    %c0_0 = arith.constant 0 : index
    %0 = vector.load %arg1[%c0, %c0_0] : memref<8x128xf32, #tpu.memory_space<vmem>>, vector<8x128xf32>
    %c0_1 = arith.constant 0 : index
    %c0_2 = arith.constant 0 : index
    %1 = vector.load %arg2[%c0_1, %c0_2] : memref<1x128xf32, #tpu.memory_space<vmem>>, vector<1x128xf32>
    %2 = vector.broadcast %1 : vector<1x128xf32> to vector<8x128xf32>
    %3 = arith.addf %0, %2 : vector<8x128xf32>
    %c0_3 = arith.constant 0 : index
    %c0_4 = arith.constant 0 : index
    %4 = vector.load %arg3[%c0_3, %c0_4] : memref<8x128xf32, #tpu.memory_space<vmem>>, vector<8x128xf32>
    tpu.vector_store %arg3[%c0_3, %c0_4], %3 {strides = array<i32>} : memref<8x128xf32, #tpu.memory_space<vmem>>, vector<8x128xf32>,
    return
  }
  func.func @transform_0(%arg0: i32) -> (i32, i32) {
    %c0_i32 = arith.constant 0 : i32
    %c0_i32_0 = arith.constant 0 : i32
    return %arg0, %c0_i32 : i32, i32
  }
  func.func @transform_1(%arg0: i32) -> (i32, i32) {
    %c0_i32 = arith.constant 0 : i32
    %c0_i32_0 = arith.constant 0 : i32
    %c0_i32_1 = arith.constant 0 : i32
    return %c0_i32, %c0_i32_0 : i32, i32
  }
  func.func @transform_2(%arg0: i32) -> (i32, i32) {
    %c0_i32 = arith.constant 0 : i32
    %c0_i32_0 = arith.constant 0 : i32
    return %arg0, %c0_i32 : i32, i32
  }
}

</mosaic_0001>

<bundles_post_ra>
// kernel: tile.6
= control target key start
LH: loop header
LB: loop body
LE: loop exit
PB: predicated region body
PF: predicated region fallthrough
CT: control target
= control target key end

     0   :  { %s64_s0 = inlined_call_operand.vmem [shape: f32[2], index: 0, kind: input, shape index: {}]   ;;  %s65_s1 = inlined_call_operand.vmem [shape: f32[64,2], index: 1, kind: output, shape index: {}]  }
   0x1   :  { %v4_v0 = vld [vmem:[%s64_s0] ss:$0 sm:$0xff] }
   0x2   :  { %5 = vst [vmem:[%s65_s1] sm:$0xff] %v4_v0 }
   0x3   :  { %20 = vst [vmem:[%s65_s1 + $0x8] sm:$0xff] %v4_v0 }
   0x4   :  { %21 = vst [vmem:[%s65_s1 + $0x10] sm:$0xff] %v4_v0 }
   0x5   :  { %22 = vst [vmem:[%s65_s1 + $0x18] sm:$0xff] %v4_v0 }
   0x6   :  { %23 = vst [vmem:[%s65_s1 + $0x20] sm:$0xff] %v4_v0 }
   0x7   :  { %24 = vst [vmem:[%s65_s1 + $0x28] sm:$0xff] %v4_v0 }
   0x8   :  { %25 = vst [vmem:[%s65_s1 + $0x30] sm:$0xff] %v4_v0 }
   0x9   :  { %26 = vst [vmem:[%s65_s1 + $0x38] sm:$0xff] %v4_v0 }

// kernel: tile.7
= control target key start
LH: loop header
LB: loop body
LE: loop exit
PB: predicated region body
PF: predicated region fallthrough
CT: control target
= control target key end

     0   :  { %s515_s10 = smov 126   ;;  %s516_s11 = smov 122   ;;  %vm3_vm0 = vcmask 15360   ;;  %vm9_vm1 = vcmask 1048560   ;;  %vm15_vm2 = vcmask 1032160   ;;  %vm21_vm3 = vcmask 1015760   ;;  %s783_s0 = inlined_call_operand.vmem [shape: f32[64,2], index: 0, kind: input, shape index: {}]   ;;  %s784_s1 = inlined_call_operand.vmem [shape: f32[1,128], index: 1, kind: output, shape index: {}]  }
   0x1   :  { %v389_v0 = vld [vmem:[%s783_s0 + $0x3f] sm:$0x1]   ;;  %v391_v1 = vld [vmem:[%s783_s0 + $0x3d] sm:$0x1]   ;;  %v393_v2 = vld [vmem:[%s783_s0 + $0x3b] sm:$0x1]  }
   0x2   :  { %7 = vrot.lane.b32.xlu0 %v389_v0, %s515_s10  ;;  %19 = vrot.lane.b32.xlu1 %v391_v1, %s516_s11  ;;  %s517_s14 = smov 118   ;;  %v390_v3 = vld [vmem:[%s783_s0 + $0x3e] sm:$0x1]   ;;  %v392_v4 = vld [vmem:[%s783_s0 + $0x3c] sm:$0x1]   ;;  %s518_s19 = smov 124  }
   0x3   :  { %31 = vrot.lane.b32.xlu2 %v393_v2, %s517_s14  ;;  %s519_s20 = smov 120   ;;  %v394_v5 = vld [vmem:[%s783_s0 + $0x3a] sm:$0x1]   ;;  %s520_s23 = smov 116   ;;  %v395_v6 = vld [vmem:[%s783_s0 + $0x39] sm:$0x1]  }
   0x4   :  { %v396_v7 = vld [vmem:[%s783_s0 + $0x38] sm:$0x1]   ;;  %s521_s28 = smov 114   ;;  %s522_s29 = smov 112   ;;  %v397_v8 = vld [vmem:[%s783_s0 + $0x37] sm:$0x1]  }
   0x5   :  { %s523_s3 = smov 110   ;;  %v398_v9 = vld [vmem:[%s783_s0 + $0x36] sm:$0x1]   ;;  %v399_v10 = vld [vmem:[%s783_s0 + $0x35] sm:$0x1]   ;;  %s524_s8 = smov 108  }
   0x6   :  { %s525_s9 = smov 106   ;;  %v400_v11 = vld [vmem:[%s783_s0 + $0x34] sm:$0x1]   ;;  %s526_s12 = smov 104   ;;  %v401_v12 = vld [vmem:[%s783_s0 + $0x33] sm:$0x1]  }
   0x7   :  { %v402_v13 = vld [vmem:[%s783_s0 + $0x32] sm:$0x1]   ;;  %s527_s17 = smov 102   ;;  %s528_s18 = smov 100   ;;  %v403_v14 = vld [vmem:[%s783_s0 + $0x31] sm:$0x1]  }
   0x8   :  { %s529_s21 = smov 98   ;;  %v404_v15 = vld [vmem:[%s783_s0 + $0x30] sm:$0x1]   ;;  %v405_v16 = vld [vmem:[%s783_s0 + $0x2f] sm:$0x1]   ;;  %s530_s26 = smov 96  }
   0x9   :  { %s531_s27 = smov 94   ;;  %v406_v17 = vld [vmem:[%s783_s0 + $0x2e] sm:$0x1]   ;;  %s532_s30 = smov 92   ;;  %v407_v18 = vld [vmem:[%s783_s0 + $0x2d] sm:$0x1]  }
   0xa   :  { %13 = vrot.lane.b32.xlu0 %v390_v3, %s518_s19  ;;  %25 = vrot.lane.b32.xlu1 %v392_v4, %s519_s20  ;;  %v408_v19 = vld [vmem:[%s783_s0 + $0x2c] sm:$0x1]   ;;  %s533_s6 = smov 90   ;;  %s534_s7 = smov 88   ;;  %v409_v20 = vld [vmem:[%s783_s0 + $0x2b] sm:$0x1]  }
   0xb   :  { %37 = vrot.lane.b32.xlu2 %v394_v5, %s520_s23  ;;  %s535_s10 = smov 86   ;;  %v410_v21 = vld [vmem:[%s783_s0 + $0x2a] sm:$0x1]   ;;  %v411_v22 = vld [vmem:[%s783_s0 + $0x29] sm:$0x1]   ;;  %s536_s15 = smov 84  }
   0xc   :  { %s537_s16 = smov 82   ;;  %v412_v23 = vld [vmem:[%s783_s0 + $0x28] sm:$0x1]   ;;  %s538_s19 = smov 80   ;;  %v413_v24 = vld [vmem:[%s783_s0 + $0x27] sm:$0x1]  }
   0xd   :  { %v414_v25 = vld [vmem:[%s783_s0 + $0x26] sm:$0x1]   ;;  %s539_s24 = smov 78   ;;  %s540_s25 = smov 76   ;;  %v415_v26 = vld [vmem:[%s783_s0 + $0x25] sm:$0x1]  }
   0xe   :  { %v416_v27 = vld [vmem:[%s783_s0 + $0x24] sm:$0x1]   ;;  %v417_v28 = vld [vmem:[%s783_s0 + $0x23] sm:$0x1]   ;;  %s542_s4 = smov 72   ;;  %s543_s5 = smov 70  }
   0xf   :  { %v418_v29 = vld [vmem:[%s783_s0 + $0x22] sm:$0x1]   ;;  %v419_v30 = vld [vmem:[%s783_s0 + $0x21] sm:$0x1]   ;;  %v420_v31 = vld [vmem:[%s783_s0 + $0x20] sm:$0x1]  }
  0x10   :  { %s545_s13 = smov 66   ;;  %s546_s14 = smov 64   ;;  %v421_v32 = vld [vmem:[%s783_s0 + $0x1f] sm:$0x1]   ;;  %v2_v33 = vld [vmem:[%s783_s0] sm:$0x1]  }
  0x11   :  { %4 = vst.msk [vmem:[#allocation0] sm:$0x1] %vm3_vm0, %v2_v33   ;;  %v422_v34 = vld [vmem:[%s783_s0 + $0x1e] sm:$0x1]   ;;  %v423_v35 = vld [vmem:[%s783_s0 + $0x1d] sm:$0x1]  }
  0x12   :  { %43 = vrot.lane.b32.xlu0 %v395_v6, %s521_s28  ;;  %49 = vrot.lane.b32.xlu1 %v396_v7, %s522_s29  ;;  %s541_s28 = smov 74   ;;  %v424_v36 = vld [vmem:[%s783_s0 + $0x1c] sm:$0x1]   ;;  %v425_v37 = vld [vmem:[%s783_s0 + $0x1b] sm:$0x1]   ;;  %s557_s22 = smov 42  }
  0x13   :  { %55 = vrot.lane.b32.xlu2 %v397_v8, %s523_s3  ;;  %v426_v38 = vld [vmem:[%s783_s0 + $0x1a] sm:$0x1]   ;;  %v427_v40 = vld [vmem:[%s783_s0 + $0x19] sm:$0x1]   ;;  %v428_v41 = vld [vmem:[%s783_s0 + $0x18] sm:$0x1]  }
  0x14   :  { %v429_v42 = vld [vmem:[%s783_s0 + $0x17] sm:$0x1]   ;;  %v430_v44 = vld [vmem:[%s783_s0 + $0x16] sm:$0x1]   ;;  %v431_v45 = vld [vmem:[%s783_s0 + $0x15] sm:$0x1]  }
  0x15   :  { %v432_v46 = vld [vmem:[%s783_s0 + $0x14] sm:$0x1]   ;;  %s558_s23 = smov 40   ;;  %v433_v48 = vld [vmem:[%s783_s0 + $0x13] sm:$0x1]   ;;  %s560_s2 = smov 36  }
  0x16   :  { %v434_v51 = vld [vmem:[%s783_s0 + $0x12] sm:$0x1]   ;;  %v435_v52 = vld [vmem:[%s783_s0 + $0x11] sm:$0x1]   ;;  %s561_s3 = smov 34   ;;  %vm27_vm4 = vcmask 999360  }
  0x17   :  { %v436_v54 = vld [vmem:[%s783_s0 + $0x10] sm:$0x1]   ;;  %vm33_vm5 = vcmask 982960   ;;  %vm39_vm6 = vcmask 966560   ;;  %v437_v57 = vld [vmem:[%s783_s0 + $0xf] sm:$0x1]  }
  0x18   :  { %v438_v58 = vld [vmem:[%s783_s0 + $0xe] sm:$0x1]   ;;  %s563_s11 = smov 30   ;;  %vm45_vm7 = vcmask 950160   ;;  %vm51_vm8 = vcmask 933760   ;;  %vm57_vm9 = vcmask 917360  }
  0x19   :  { %v439_v60 = vld [vmem:[%s783_s0 + $0xd] sm:$0x1]   ;;  %v440_v63 = vld [vmem:[%s783_s0 + $0xc] sm:$0x1]   ;;  %v441_v0 = vld [vmem:[%s783_s0 + $0xb] sm:$0x1]  }
  0x1a   :  { %61 = vrot.lane.b32.xlu0 %v398_v9, %s524_s8  ;;  %67 = vrot.lane.b32.xlu1 %v399_v10, %s525_s9  ;;  %s544_s8 = smov 68   ;;  %s566_s20 = smov 24   ;;  %vm63_vm10 = vcmask 900960   ;;  %vm69_vm11 = vcmask 884560   ;;  %v442_v2 = vld [vmem:[%s783_s0 + $0xa] sm:$0x1]  }
  0x1b   :  { %73 = vrot.lane.b32.xlu2 %v400_v11, %s526_s12  ;;  %s564_s12 = smov 28   ;;  %vm75_vm12 = vcmask 868160   ;;  %v443_v5 = vld [vmem:[%s783_s0 + $0x9] sm:$0x1]   ;;  %v444_v6 = vld [vmem:[%s783_s0 + $0x8] sm:$0x1]  }
  0x1c   :  { %s569_s29 = smov 18   ;;  %vm81_vm13 = vcmask 851760   ;;  %vm87_vm14 = vcmask 835360   ;;  %v445_v8 = vld [vmem:[%s783_s0 + $0x7] sm:$0x1]   ;;  %vm93_vm15 = vcmask 818960  }
  0x1d   :  { %v446_v11 = vld [vmem:[%s783_s0 + $0x6] sm:$0x1]   ;;  %s572_s9 = smov 12   ;;  %vm99_vm0 = vcmask 802560  }
  0x22   :  { %79 = vrot.lane.b32.xlu0 %v401_v12, %s527_s17  ;;  %85 = vrot.lane.b32.xlu1 %v402_v13, %s528_s18  ;;  %s556_s17 = smov 44   ;;  %v447_v12 = vld [vmem:[%s783_s0 + $0x5] sm:$0x1]   ;;  %s575_s18 = smov 6  }
  0x23   :  { %91 = vrot.lane.b32.xlu2 %v403_v14, %s529_s21  ;;  %s567_s21 = smov 22   ;;  %v448_v14 = vld [vmem:[%s783_s0 + $0x4] sm:$0x1]  }
  0x2a   :  { %97 = vrot.lane.b32.xlu0 %v404_v15, %s530_s26  ;;  %103 = vrot.lane.b32.xlu1 %v405_v16, %s531_s27  ;;  %s559_s26 = smov 38  }
  0x2b   :  { %109 = vrot.lane.b32.xlu2 %v406_v17, %s532_s30  ;;  %s570_s30 = smov 16   ;;  %v449_v17 = vld [vmem:[%s783_s0 + $0x3] sm:$0x1]  }
  0x32   :  { %115 = vrot.lane.b32.xlu0 %v407_v18, %s533_s6  ;;  %121 = vrot.lane.b32.xlu1 %v408_v19, %s534_s7  ;;  %s562_s6 = smov 32   ;;  %v450_v18 = vld [vmem:[%s783_s0 + $0x2] sm:$0x1]  }
  0x33   :  { %127 = vrot.lane.b32.xlu2 %v409_v20, %s535_s10  ;;  %s573_s10 = smov 10   ;;  %v451_v20 = vld [vmem:[%s783_s0 + $0x1] sm:$0x1]   ;;  %s577_s0 = smov 2  }
  0x3a   :  { %133 = vrot.lane.b32.xlu0 %v410_v21, %s536_s15  ;;  %139 = vrot.lane.b32.xlu1 %v411_v22, %s537_s16  ;;  %s565_s15 = smov 26  }
  0x3b   :  { %145 = vrot.lane.b32.xlu2 %v412_v23, %s538_s19  ;;  %s547_s19 = smov 62  }
  0x42   :  { %151 = vrot.lane.b32.xlu0 %v413_v24, %s539_s24  ;;  %157 = vrot.lane.b32.xlu1 %v414_v25, %s540_s25  ;;  %s548_s24 = smov 60   ;;  %s549_s25 = smov 58  }
  0x43   :  { %163 = vrot.lane.b32.xlu2 %v415_v26, %s541_s28  ;;  %s550_s28 = smov 56  }
  0x4a   :  { %169 = vrot.lane.b32.xlu0 %v416_v27, %s542_s4  ;;  %175 = vrot.lane.b32.xlu1 %v417_v28, %s543_s5  ;;  %s551_s4 = smov 54   ;;  %s552_s5 = smov 52  }
  0x4b   :  { %181 = vrot.lane.b32.xlu2 %v418_v29, %s544_s8  ;;  %s553_s8 = smov 50  }
  0x52   :  { %187 = vrot.lane.b32.xlu0 %v419_v30, %s545_s13  ;;  %193 = vrot.lane.b32.xlu1 %v420_v31, %s546_s14  ;;  %s554_s13 = smov 48   ;;  %s555_s14 = smov 46  }
  0x53   :  { %199 = vrot.lane.b32.xlu2 %v421_v32, %s547_s19  ;;  %s576_s19 = smov 4  }
  0x5a   :  { %205 = vrot.lane.b32.xlu0 %v422_v34, %s548_s24  ;;  %211 = vrot.lane.b32.xlu1 %v423_v35, %s549_s25  ;;  %s568_s24 = smov 20  }
  0x5b   :  { %217 = vrot.lane.b32.xlu2 %v424_v36, %s550_s28 }
  0x5d   :  { %v32_v39 = vpop.permute.xlu2 %31  }
  0x62   :  { %223 = vrot.lane.b32.xlu0 %v425_v37, %s551_s4  ;;  %229 = vrot.lane.b32.xlu1 %v426_v38, %s552_s5  ;;  %s571_s4 = smov 14  }
  0x63   :  { %235 = vrot.lane.b32.xlu2 %v427_v40, %s553_s8 }
  0x65   :  { %v38_v43 = vpop.permute.xlu2 %37  }
  0x6a   :  { %241 = vrot.lane.b32.xlu0 %v428_v41, %s554_s13  ;;  %247 = vrot.lane.b32.xlu1 %v429_v42, %s555_s14  ;;  %s574_s13 = smov 8  }
  0x6b   :  { %253 = vrot.lane.b32.xlu2 %v430_v44, %s556_s17 }
  0x6d   :  { %v56_v47 = vpop.permute.xlu2 %55  }
  0x72   :  { %259 = vrot.lane.b32.xlu0 %v431_v45, %s557_s22  ;;  %265 = vrot.lane.b32.xlu1 %v432_v46, %s558_s23 }
  0x73   :  { %271 = vrot.lane.b32.xlu2 %v433_v48, %s559_s26 }
  0x74   :  { %v8_v49 = vpop.permute.xlu0 %7   ;;  %v20_v50 = vpop.permute.xlu1 %19  }
  0x75   :  { %10 = vst.msk [vmem:[#allocation0] sm:$0x1] %vm9_vm1, %v8_v49   ;;  %v74_v53 = vpop.permute.xlu2 %73   ;;  %vm105_vm1 = vcmask 786160  }
  0x7a   :  { %277 = vrot.lane.b32.xlu0 %v434_v51, %s560_s2  ;;  %283 = vrot.lane.b32.xlu1 %v435_v52, %s561_s3 }
  0x7b   :  { %289 = vrot.lane.b32.xlu2 %v436_v54, %s562_s6 }
  0x7c   :  { %v14_v55 = vpop.permute.xlu0 %13   ;;  %v26_v56 = vpop.permute.xlu1 %25  }
  0x7d   :  { %16 = vst.msk [vmem:[#allocation0] sm:$0x1] %vm15_vm2, %v14_v55   ;;  %v92_v59 = vpop.permute.xlu2 %91   ;;  %vm111_vm2 = vcmask 769760  }
  0x7e   :  { %22 = vst.msk [vmem:[#allocation0] sm:$0x1] %vm21_vm3, %v20_v50   ;;  %vm117_vm3 = vcmask 753360  }
  0x7f   :  { %28 = vst.msk [vmem:[#allocation0] sm:$0x1] %vm27_vm4, %v26_v56   ;;  %vm123_vm4 = vcmask 736960  }
  0x80   :  { %34 = vst.msk [vmem:[#allocation0] sm:$0x1] %vm33_vm5, %v32_v39   ;;  %vm129_vm5 = vcmask 720560  }
  0x81   :  { %40 = vst.msk [vmem:[#allocation0] sm:$0x1] %vm39_vm6, %v38_v43   ;;  %vm135_vm6 = vcmask 704160  }
  0x82   :  { %295 = vrot.lane.b32.xlu0 %v437_v57, %s563_s11  ;;  %301 = vrot.lane.b32.xlu1 %v438_v58, %s564_s12 }
  0x83   :  { %307 = vrot.lane.b32.xlu2 %v439_v60, %s565_s15 }
  0x84   :  { %v44_v61 = vpop.permute.xlu0 %43   ;;  %v50_v62 = vpop.permute.xlu1 %49  }
  0x85   :  { %46 = vst.msk [vmem:[#allocation0] sm:$0x1] %vm45_vm7, %v44_v61   ;;  %v110_v1 = vpop.permute.xlu2 %109   ;;  %vm141_vm7 = vcmask 687760  }
  0x86   :  { %52 = vst.msk [vmem:[#allocation0] sm:$0x1] %vm51_vm8, %v50_v62   ;;  %vm147_vm8 = vcmask 671360  }
  0x87   :  { %58 = vst.msk [vmem:[#allocation0] sm:$0x1] %vm57_vm9, %v56_v47   ;;  %vm153_vm9 = vcmask 654960  }
  0x8a   :  { %313 = vrot.lane.b32.xlu0 %v440_v63, %s566_s20  ;;  %319 = vrot.lane.b32.xlu1 %v441_v0, %s567_s21 }
  0x8b   :  { %325 = vrot.lane.b32.xlu2 %v442_v2, %s568_s24 }
  0x8c   :  { %v62_v3 = vpop.permute.xlu0 %61   ;;  %v68_v4 = vpop.permute.xlu1 %67  }
  0x8d   :  { %64 = vst.msk [vmem:[#allocation0] sm:$0x1] %vm63_vm10, %v62_v3   ;;  %v128_v7 = vpop.permute.xlu2 %127   ;;  %vm159_vm10 = vcmask 638560  }
  0x8e   :  { %70 = vst.msk [vmem:[#allocation0] sm:$0x1] %vm69_vm11, %v68_v4   ;;  %vm165_vm11 = vcmask 622160  }
  0x8f   :  { %76 = vst.msk [vmem:[#allocation0] sm:$0x1] %vm75_vm12, %v74_v53   ;;  %vm171_vm12 = vcmask 605760  }
  0x92   :  { %331 = vrot.lane.b32.xlu0 %v443_v5, %s569_s29  ;;  %337 = vrot.lane.b32.xlu1 %v444_v6, %s570_s30 }
  0x93   :  { %343 = vrot.lane.b32.xlu2 %v445_v8, %s571_s4 }
  0x94   :  { %v80_v9 = vpop.permute.xlu0 %79   ;;  %v86_v10 = vpop.permute.xlu1 %85  }
  0x95   :  { %82 = vst.msk [vmem:[#allocation0] sm:$0x1] %vm81_vm13, %v80_v9   ;;  %v146_v13 = vpop.permute.xlu2 %145   ;;  %vm177_vm13 = vcmask 589360  }
  0x96   :  { %88 = vst.msk [vmem:[#allocation0] sm:$0x1] %vm87_vm14, %v86_v10   ;;  %vm183_vm14 = vcmask 572960  }
  0x97   :  { %94 = vst.msk [vmem:[#allocation0] sm:$0x1] %vm93_vm15, %v92_v59   ;;  %vm189_vm15 = vcmask 556560  }
  0x9a   :  { %349 = vrot.lane.b32.xlu0 %v446_v11, %s572_s9  ;;  %355 = vrot.lane.b32.xlu1 %v447_v12, %s573_s10 }
  0x9b   :  { %361 = vrot.lane.b32.xlu2 %v448_v14, %s574_s13 }
  0x9c   :  { %v98_v15 = vpop.permute.xlu0 %97   ;;  %v104_v16 = vpop.permute.xlu1 %103  }
  0x9d   :  { %100 = vst.msk [vmem:[#allocation0] sm:$0x1] %vm99_vm0, %v98_v15   ;;  %v164_v19 = vpop.permute.xlu2 %163   ;;  %vm195_vm0 = vcmask 540160  }
  0x9e   :  { %106 = vst.msk [vmem:[#allocation0] sm:$0x1] %vm105_vm1, %v104_v16   ;;  %vm201_vm1 = vcmask 523760  }
  0x9f   :  { %112 = vst.msk [vmem:[#allocation0] sm:$0x1] %vm111_vm2, %v110_v1   ;;  %vm207_vm2 = vcmask 507360  }
  0xa2   :  { %367 = vrot.lane.b32.xlu0 %v449_v17, %s575_s18  ;;  %373 = vrot.lane.b32.xlu1 %v450_v18, %s576_s19 }
  0xa3   :  { %379 = vrot.lane.b32.xlu2 %v451_v20, %s577_s0 }
  0xa4   :  { %v116_v21 = vpop.permute.xlu0 %115   ;;  %v122_v22 = vpop.permute.xlu1 %121  }
  0xa5   :  { %118 = vst.msk [vmem:[#allocation0] sm:$0x1] %vm117_vm3, %v116_v21   ;;  %v182_v23 = vpop.permute.xlu2 %181   ;;  %vm213_vm3 = vcmask 490960  }
  0xa6   :  { %124 = vst.msk [vmem:[#allocation0] sm:$0x1] %vm123_vm4, %v122_v22   ;;  %vm219_vm4 = vcmask 474560  }
  0xa7   :  { %130 = vst.msk [vmem:[#allocation0] sm:$0x1] %vm129_vm5, %v128_v7   ;;  %vm225_vm5 = vcmask 458160  }
  0xac   :  { %v134_v24 = vpop.permute.xlu0 %133   ;;  %v140_v25 = vpop.permute.xlu1 %139  }
  0xad   :  { %136 = vst.msk [vmem:[#allocation0] sm:$0x1] %vm135_vm6, %v134_v24   ;;  %v200_v26 = vpop.permute.xlu2 %199   ;;  %vm231_vm6 = vcmask 441760  }
  0xae   :  { %142 = vst.msk [vmem:[#allocation0] sm:$0x1] %vm141_vm7, %v140_v25   ;;  %vm237_vm7 = vcmask 425360  }
  0xaf   :  { %148 = vst.msk [vmem:[#allocation0] sm:$0x1] %vm147_vm8, %v146_v13   ;;  %vm243_vm8 = vcmask 408960  }
  0xb4   :  { %v152_v27 = vpop.permute.xlu0 %151   ;;  %v158_v28 = vpop.permute.xlu1 %157  }
  0xb5   :  { %154 = vst.msk [vmem:[#allocation0] sm:$0x1] %vm153_vm9, %v152_v27   ;;  %v218_v29 = vpop.permute.xlu2 %217   ;;  %vm249_vm9 = vcmask 392560  }
  0xb6   :  { %160 = vst.msk [vmem:[#allocation0] sm:$0x1] %vm159_vm10, %v158_v28   ;;  %vm255_vm10 = vcmask 376160  }
  0xb7   :  { %166 = vst.msk [vmem:[#allocation0] sm:$0x1] %vm165_vm11, %v164_v19   ;;  %vm261_vm11 = vcmask 359760  }
  0xbc   :  { %v170_v30 = vpop.permute.xlu0 %169   ;;  %v176_v31 = vpop.permute.xlu1 %175  }
  0xbd   :  { %172 = vst.msk [vmem:[#allocation0] sm:$0x1] %vm171_vm12, %v170_v30   ;;  %v236_v32 = vpop.permute.xlu2 %235   ;;  %vm267_vm12 = vcmask 343360  }
  0xbe   :  { %178 = vst.msk [vmem:[#allocation0] sm:$0x1] %vm177_vm13, %v176_v31   ;;  %vm273_vm13 = vcmask 326960  }
  0xbf   :  { %184 = vst.msk [vmem:[#allocation0] sm:$0x1] %vm183_vm14, %v182_v23   ;;  %vm279_vm14 = vcmask 310560  }
  0xc4   :  { %v188_v33 = vpop.permute.xlu0 %187   ;;  %v194_v34 = vpop.permute.xlu1 %193  }
  0xc5   :  { %190 = vst.msk [vmem:[#allocation0] sm:$0x1] %vm189_vm15, %v188_v33   ;;  %v254_v35 = vpop.permute.xlu2 %253   ;;  %vm285_vm15 = vcmask 294160  }
  0xc6   :  { %196 = vst.msk [vmem:[#allocation0] sm:$0x1] %vm195_vm0, %v194_v34   ;;  %vm291_vm0 = vcmask 277760  }
  0xc7   :  { %202 = vst.msk [vmem:[#allocation0] sm:$0x1] %vm201_vm1, %v200_v26   ;;  %vm297_vm1 = vcmask 261360  }
  0xcc   :  { %v206_v36 = vpop.permute.xlu0 %205   ;;  %v212_v37 = vpop.permute.xlu1 %211  }
  0xcd   :  { %208 = vst.msk [vmem:[#allocation0] sm:$0x1] %vm207_vm2, %v206_v36   ;;  %v272_v38 = vpop.permute.xlu2 %271   ;;  %vm303_vm2 = vcmask 244960  }
  0xce   :  { %214 = vst.msk [vmem:[#allocation0] sm:$0x1] %vm213_vm3, %v212_v37   ;;  %vm309_vm3 = vcmask 228560  }
  0xcf   :  { %220 = vst.msk [vmem:[#allocation0] sm:$0x1] %vm219_vm4, %v218_v29   ;;  %vm315_vm4 = vcmask 212160  }
  0xd4   :  { %v224_v39 = vpop.permute.xlu0 %223   ;;  %v230_v40 = vpop.permute.xlu1 %229  }
  0xd5   :  { %226 = vst.msk [vmem:[#allocation0] sm:$0x1] %vm225_vm5, %v224_v39   ;;  %v290_v41 = vpop.permute.xlu2 %289   ;;  %vm321_vm5 = vcmask 195760  }
  0xd6   :  { %232 = vst.msk [vmem:[#allocation0] sm:$0x1] %vm231_vm6, %v230_v40   ;;  %vm327_vm6 = vcmask 179360  }
  0xd7   :  { %238 = vst.msk [vmem:[#allocation0] sm:$0x1] %vm237_vm7, %v236_v32   ;;  %vm333_vm7 = vcmask 162960  }
  0xdc   :  { %v242_v42 = vpop.permute.xlu0 %241   ;;  %v248_v43 = vpop.permute.xlu1 %247  }
  0xdd   :  { %244 = vst.msk [vmem:[#allocation0] sm:$0x1] %vm243_vm8, %v242_v42   ;;  %v308_v44 = vpop.permute.xlu2 %307   ;;  %vm339_vm8 = vcmask 146560  }
  0xde   :  { %250 = vst.msk [vmem:[#allocation0] sm:$0x1] %vm249_vm9, %v248_v43   ;;  %vm345_vm9 = vcmask 130160  }
  0xdf   :  { %256 = vst.msk [vmem:[#allocation0] sm:$0x1] %vm255_vm10, %v254_v35   ;;  %vm351_vm10 = vcmask 113760  }
  0xe4   :  { %v260_v45 = vpop.permute.xlu0 %259   ;;  %v266_v46 = vpop.permute.xlu1 %265  }
  0xe5   :  { %262 = vst.msk [vmem:[#allocation0] sm:$0x1] %vm261_vm11, %v260_v45   ;;  %v326_v47 = vpop.permute.xlu2 %325   ;;  %vm357_vm11 = vcmask 97360  }
  0xe6   :  { %268 = vst.msk [vmem:[#allocation0] sm:$0x1] %vm267_vm12, %v266_v46   ;;  %vm363_vm12 = vcmask 80960  }
  0xe7   :  { %274 = vst.msk [vmem:[#allocation0] sm:$0x1] %vm273_vm13, %v272_v38   ;;  %vm369_vm13 = vcmask 64560  }
  0xec   :  { %v278_v48 = vpop.permute.xlu0 %277   ;;  %v284_v49 = vpop.permute.xlu1 %283  }
  0xed   :  { %280 = vst.msk [vmem:[#allocation0] sm:$0x1] %vm279_vm14, %v278_v48   ;;  %v344_v50 = vpop.permute.xlu2 %343   ;;  %vm375_vm14 = vcmask 48160  }
  0xee   :  { %286 = vst.msk [vmem:[#allocation0] sm:$0x1] %vm285_vm15, %v284_v49   ;;  %vm381_vm15 = vcmask 31760  }
  0xef   :  { %292 = vst.msk [vmem:[#allocation0] sm:$0x1] %vm291_vm0, %v290_v41  }
  0xf4   :  { %v296_v51 = vpop.permute.xlu0 %295   ;;  %v302_v52 = vpop.permute.xlu1 %301  }
  0xf5   :  { %298 = vst.msk [vmem:[#allocation0] sm:$0x1] %vm297_vm1, %v296_v51   ;;  %v362_v53 = vpop.permute.xlu2 %361  }
  0xf6   :  { %304 = vst.msk [vmem:[#allocation0] sm:$0x1] %vm303_vm2, %v302_v52  }
  0xf7   :  { %310 = vst.msk [vmem:[#allocation0] sm:$0x1] %vm309_vm3, %v308_v44  }
  0xfc   :  { %v314_v54 = vpop.permute.xlu0 %313   ;;  %v320_v55 = vpop.permute.xlu1 %319  }
  0xfd   :  { %316 = vst.msk [vmem:[#allocation0] sm:$0x1] %vm315_vm4, %v314_v54   ;;  %v380_v56 = vpop.permute.xlu2 %379  }
  0xfe   :  { %322 = vst.msk [vmem:[#allocation0] sm:$0x1] %vm321_vm5, %v320_v55  }
  0xff   :  { %328 = vst.msk [vmem:[#allocation0] sm:$0x1] %vm327_vm6, %v326_v47  }
 0x104   :  { %v332_v57 = vpop.permute.xlu0 %331   ;;  %v338_v58 = vpop.permute.xlu1 %337  }
 0x105   :  { %334 = vst.msk [vmem:[#allocation0] sm:$0x1] %vm333_vm7, %v332_v57  }
 0x106   :  { %340 = vst.msk [vmem:[#allocation0] sm:$0x1] %vm339_vm8, %v338_v58  }
 0x107   :  { %346 = vst.msk [vmem:[#allocation0] sm:$0x1] %vm345_vm9, %v344_v50  }
 0x10c   :  { %v350_v59 = vpop.permute.xlu0 %349   ;;  %v356_v60 = vpop.permute.xlu1 %355  }
 0x10d   :  { %352 = vst.msk [vmem:[#allocation0] sm:$0x1] %vm351_vm10, %v350_v59  }
 0x10e   :  { %358 = vst.msk [vmem:[#allocation0] sm:$0x1] %vm357_vm11, %v356_v60  }
 0x10f   :  { %364 = vst.msk [vmem:[#allocation0] sm:$0x1] %vm363_vm12, %v362_v53  }
 0x114   :  { %v368_v61 = vpop.permute.xlu0 %367   ;;  %v374_v62 = vpop.permute.xlu1 %373  }
 0x115   :  { %370 = vst.msk [vmem:[#allocation0] sm:$0x1] %vm369_vm13, %v368_v61  }
 0x116   :  { %376 = vst.msk [vmem:[#allocation0] sm:$0x1] %vm375_vm14, %v374_v62  }
 0x117   :  { %382 = vst.msk [vmem:[#allocation0] sm:$0x1] %vm381_vm15, %v380_v56  }
 0x11e   :  { %v385_v63 = vld [vmem:[#allocation0] sm:$0x1] }
 0x11f   :  { %388 = vst [vmem:[%s784_s1] sm:$0x1] %v385_v63 }

// kernel: test_model_forward.2
= control target key start
LH: loop header
LB: loop body
LE: loop exit
PB: predicated region body
PF: predicated region fallthrough
CT: control target
= control target key end

     0   :  { %v14_v2 = vlaneseq  ;;  %s65_s0 = inlined_call_operand.vmem [shape: f32[1,128], index: 0, kind: input, shape index: {}]   ;;  %s66_s1 = inlined_call_operand.vmem [shape: f32[16], index: 1, kind: input, shape index: {}]   ;;  %s67_s2 = inlined_call_operand.<no memory space> [shape: f32[], index: 2, kind: input, shape index: {}]   ;;  %s68_s3 = inlined_call_operand.vmem [shape: f32[8,128], index: 3, kind: output, shape index: {}]  }
   0x1   :  { %v8_v0 = vstv %s67_s2  ;;  %v13_v1 = vld [vmem:[%s66_s1] sm:$0x1] }
   0x2   :  { %v32_v3 = vld [vmem:[%s65_s0] ss:$0 sm:$0xff]  ;;  %vm16_vm0 = vcmp.lt.s32.totalorder %v14_v2, 16 }
   0x3   :  { %v17_v4 = vsel %vm16_vm0, %v13_v1, %v8_v0 }
   0x4   :  { %v26_v5 = vadd.f32 %v32_v3, %v17_v4 }
   0x6   :  { %27 = vst [vmem:[%s68_s3] sm:$0xff] %v26_v5 }

</bundles_post_ra>
